<compile_context>
chip_gen: v7x
topology: tpu7x:2x2x1
jax: 0.10.0
libtpu: 0.0.40
codegen_flags: <defaults>
</compile_context>

<pallas_src>
import functools
import math

import jax
import jax.numpy as jnp
import numpy as np
from jax.experimental import pallas as pl
from jax.experimental.pallas import tpu as pltpu


_PALLAS_MIN_ELEMENTS = 1 << 15  # below this, XLA fusion beats any pallas_call


def _round_up(x: int, m: int) -> int:
    return ((x + m - 1) // m) * m


def _cdiv(a: int, b: int) -> int:
    return -(-a // b)


@functools.lru_cache(maxsize=None)
def _pe_tables_np(dim: int, max_period: float):
    """Host-side numpy tables, cached per (dim, max_period).

    freq_full : (1, dim) log-spaced frequencies, duplicated for cos/sin halves
    phase_full: (1, dim) 0 for the cos half, pi/2 for the sin half
                (cos(x - pi/2) == sin(x))
    mask      : (1, dim) 1 everywhere except the odd trailing pad column
    """
    half = dim // 2
    freqs = np.exp(
        -math.log(max_period) * np.arange(half, dtype=np.float32) / half
    ).astype(np.float32)
    freq_full = np.zeros((1, dim), np.float32)
    phase_full = np.zeros((1, dim), np.float32)
    freq_full[0, :half] = freqs
    freq_full[0, half:2 * half] = freqs
    phase_full[0, half:2 * half] = np.float32(math.pi / 2.0)
    mask = np.zeros((1, dim), np.float32)
    mask[0, :2 * half] = 1.0
    return freq_full, phase_full, mask


def _make_pe_kernel(dim: int):
    odd = bool(dim % 2)

    if odd:
        def pe_kernel(t_ref, f_ref, p_ref, m_ref, o_ref):
            # t_ref: (TB, 1) f32; tables: (1, dim) f32; o_ref: (TB, dim)
            args = t_ref[...] * f_ref[...] - p_ref[...]            # VPU broadcast
            # One full-width lane-dense store; mask gives an exact 0 pad column.
            o_ref[...] = (jnp.cos(args) * m_ref[...]).astype(o_ref.dtype)
    else:
        def pe_kernel(t_ref, f_ref, p_ref, o_ref):
            args = t_ref[...] * f_ref[...] - p_ref[...]            # VPU broadcast
            o_ref[...] = jnp.cos(args).astype(o_ref.dtype)         # EUP + one vst

    return pe_kernel


def _vmem_working_set_cap_bytes() -> int:
    """Per-grid-step working-set budget, generation-aware (best effort)."""
    small = 12 << 20   # safe under v7x's 32 MiB scoped default / 64 MiB physical
    large = 24 << 20   # v5e / v6e have 128 MiB physical VMEM
    try:
        info = pltpu.get_tpu_info()
        vmem = getattr(info, "vmem_capacity_bytes", None)
        if vmem is None:
            return small
        return large if int(vmem) >= (100 << 20) else small
    except Exception:
        return small


def _choose_tiling(batch: int, dim: int, out_itemsize: int) -> tuple[int, int]:
    """Pick (row_tile, padded_batch).

    * row tile is a multiple of the packed-sublane count of the output dtype,
    * per-step working set (double-buffered out tile + f32 temporaries +
      lane-padded timesteps block) stays under the VMEM budget,
    * padding waste is bounded (tile sized to the batch, not a fixed 1024),
    * >= 2 grid steps whenever the batch allows, so v7x's two TensorCores both
      get work under dimension_semantics=("parallel",).
    """
    sub = max(8, 32 // max(1, out_itemsize))     # 8 f32 / 16 bf16 / 32 int8
    cap = _vmem_working_set_cap_bytes()
    per_row = (
        2 * dim * out_itemsize                    # double-buffered output tile
        + 3 * dim * 4                             # f32 args/cos/mask temporaries
        + 2 * 128 * 4                             # (tb,1) f32 block lane-pads to 128
    )
    max_rows = max(sub, min(1024, (cap // per_row) // sub * sub))

    num_tiles = max(1, _cdiv(batch, max_rows))
    if batch >= 2 * sub:
        num_tiles = max(num_tiles, 2)             # keep both v7x TCs busy
    tb = _round_up(max(1, _cdiv(batch, num_tiles)), sub)
    padded = num_tiles * tb
    return tb, padded


def _jnp_pe(t: jax.Array, dim: int, max_period: float) -> jax.Array:
    """Plain-XLA path for tiny shapes (fusion beats kernel launch overhead)."""
    half = dim // 2
    freqs = jnp.asarray(_pe_tables_np(dim, float(max_period))[0][0, :half])
    args = t[:, None] * freqs[None, :]
    emb = jnp.concatenate([jnp.cos(args), jnp.sin(args)], axis=-1)
    if dim % 2:
        emb = jnp.concatenate([emb, jnp.zeros((t.shape[0], 1), emb.dtype)], axis=-1)
    return emb


def sinusoidal_positional_encoding(
    timesteps: jax.Array,
    dim: int,
    max_period: float = 10000.0,
    *,
    out_dtype=jnp.float32,          # bf16 recommended: kernel is HBM-writeback bound
    use_pallas: bool | None = None,
    block_rows: int | None = None,
) -> jax.Array:
    """Pallas equivalent of SinusoidalPositionalEncoding(dim, max_period)(timesteps).

    Note: like torch `.squeeze()`, ALL size-1 axes are dropped (B==1 -> shape (dim,)).
    """
    if dim < 2:
        raise ValueError("SinusoidalPositionalEncoding requires dim >= 2")

    t = jnp.asarray(timesteps, jnp.float32).reshape(-1)       # (B,)
    batch = int(t.shape[0])

    if use_pallas is None:
        use_pallas = batch * dim >= _PALLAS_MIN_ELEMENTS

    if not use_pallas:
        return jnp.squeeze(_jnp_pe(t, dim, max_period).astype(out_dtype))

    out_itemsize = jnp.dtype(out_dtype).itemsize
    if block_rows is not None:
        sub = max(8, 32 // max(1, out_itemsize))
        tb = max(sub, (block_rows // sub) * sub)
        padded = _round_up(batch, tb)
    else:
        tb, padded = _choose_tiling(batch, dim, out_itemsize)

    if padded != batch:
        t = jnp.pad(t, (0, padded - batch))
    t2d = t.reshape(padded, 1)                                 # (Bp, 1)

    freq_np, phase_np, mask_np = _pe_tables_np(dim, float(max_period))
    inputs = [t2d, jnp.asarray(freq_np), jnp.asarray(phase_np)]
    in_specs = [
        pl.BlockSpec((tb, 1), lambda i: (i, 0)),               # timesteps tile
        pl.BlockSpec((1, dim), lambda i: (0, 0)),              # freqs, VMEM-resident
        pl.BlockSpec((1, dim), lambda i: (0, 0)),              # phases, VMEM-resident
    ]
    n_tables = 2
    if dim % 2:
        inputs.append(jnp.asarray(mask_np))
        in_specs.append(pl.BlockSpec((1, dim), lambda i: (0, 0)))
        n_tables = 3

    cost = pl.CostEstimate(
        flops=3 * padded * dim,                  # mul + phase sub (+ mask mul)
        transcendentals=padded * dim,            # one cos per element
        bytes_accessed=padded * dim * out_itemsize + padded * 4 + n_tables * dim * 4,
    )

    out = pl.pallas_call(
        _make_pe_kernel(dim),
        out_shape=jax.ShapeDtypeStruct((padded, dim), out_dtype),
        grid=(padded // tb,),
        in_specs=in_specs,
        out_specs=pl.BlockSpec((tb, dim), lambda i: (i, 0)),
        compiler_params=pltpu.CompilerParams(
            dimension_semantics=("parallel",),   # shards grid steps over 2 TCs on v7x
        ),
        cost_estimate=cost,
    )(*inputs)

    if padded != batch:
        out = out[:batch]

    return jnp.squeeze(out)   # torch .squeeze(): drop all size-1 axes


class SinusoidalPositionalEncoding:
    """Thin module-like wrapper mirroring the torch API."""

    def __init__(self, dim: int, max_period: float = 10000.0, *, out_dtype=jnp.float32):
        self.dim = dim
        self.max_period = max_period
        self.out_dtype = out_dtype

    def __call__(self, timesteps, **kwargs):
        return sinusoidal_positional_encoding(
            timesteps, self.dim, self.max_period, out_dtype=self.out_dtype, **kwargs)


def _reference(timesteps, dim, max_period=10000.0):
    half = dim // 2
    freqs = jnp.exp(
        -math.log(max_period) * jnp.arange(0, half, dtype=jnp.float32) / half)
    args = timesteps.astype(jnp.float32)[:, None] * freqs[None]
    emb = jnp.concatenate([jnp.cos(args), jnp.sin(args)], axis=-1)
    if dim % 2:
        emb = jnp.concatenate([emb, jnp.zeros_like(emb[:, :1])], axis=-1)
    return jnp.squeeze(emb)


if __name__ == "__main__":
    key = jax.random.PRNGKey(0)
    k1, k2, k3 = jax.random.split(key, 3)

    # Case 1: even dim (B=8, dim=32), f32 — force the Pallas path despite small size.
    B1, dim1 = 8, 32
    t1 = jax.random.uniform(k1, (B1,), dtype=jnp.float32) * 100.0
    out1 = jax.block_until_ready(
        sinusoidal_positional_encoding(t1, dim1, use_pallas=True))
    ref1 = _reference(t1, dim1)
    assert out1.shape == ref1.shape, (out1.shape, ref1.shape)
    assert jnp.allclose(out1, ref1, atol=2e-4, rtol=2e-4)

    # Case 2: odd dim + batch not a multiple of the row tile (exercises the mask
    # column and the batch-padding path).
    B2, dim2 = 10, 33
    t2 = jax.random.uniform(k2, (B2,), dtype=jnp.float32) * 100.0
    out2 = jax.block_until_ready(
        sinusoidal_positional_encoding(t2, dim2, use_pallas=True))
    ref2 = _reference(t2, dim2)
    assert out2.shape == ref2.shape, (out2.shape, ref2.shape)
    assert jnp.allclose(out2, ref2, atol=2e-4, rtol=2e-4)
    assert jnp.all(out2[:, -1] == 0.0)          # pad column must be exactly zero

    # Case 3: bf16 output (halves HBM writeback; compute stays f32 in-kernel).
    B3, dim3 = 16, 32
    t3 = jax.random.uniform(k3, (B3,), dtype=jnp.float32) * 100.0
    out3 = jax.block_until_ready(
        sinusoidal_positional_encoding(t3, dim3, out_dtype=jnp.bfloat16,
                                       use_pallas=True))
    ref3 = _reference(t3, dim3)
    assert out3.shape == ref3.shape, (out3.shape, ref3.shape)
    assert jnp.allclose(out3.astype(jnp.float32), ref3, atol=2e-2, rtol=2e-2)

    # Case 4: B == 1 — torch .squeeze() semantics drop the batch axis.
    t4 = jnp.asarray([7.5], jnp.float32)
    out4 = jax.block_until_ready(
        sinusoidal_positional_encoding(t4, dim1, use_pallas=True))
    assert out4.shape == (dim1,), out4.shape
    assert jnp.allclose(out4, _reference(t4, dim1), atol=2e-4, rtol=2e-4)

    print("KERNEL_OK")
</pallas_src>

<mosaic_0001>
module attributes {stable_mosaic.version = 11 : i64} {
  func.func @pe_kernel(%arg0: i32, %arg1: memref<8x1xf32, #tpu.memory_space<vmem>>, %arg2: memref<1x32xf32, #tpu.memory_space<vmem>>, %arg3: memref<1x32xf32, #tpu.memory_space<vmem>>, %arg4: memref<8x32xf32, #tpu.memory_space<vmem>>) attributes {dimension_semantics = [#tpu.dimension_semantics<parallel>], iteration_bounds = array<i64: 1>, scalar_prefetch = 0 : i64, scratch_operands = 0 : i64, tpu.core_type = #tpu.core_type<tc>, window_params = [{transform_indices = @transform_0, window_bounds = array<i64: 8, 1>}, {pipeline_mode = #tpu.pipeline_mode<synchronous>, transform_indices = @transform_1, window_bounds = array<i64: 1, 32>}, {pipeline_mode = #tpu.pipeline_mode<synchronous>, transform_indices = @transform_2, window_bounds = array<i64: 1, 32>}, {transform_indices = @transform_3, window_bounds = array<i64: 8, 32>}]} {
    %c0 = arith.constant 0 : index
    %c0_0 = arith.constant 0 : index
    %0 = vector.load %arg1[%c0, %c0_0] : memref<8x1xf32, #tpu.memory_space<vmem>>, vector<8x1xf32>
    %c0_1 = arith.constant 0 : index
    %c0_2 = arith.constant 0 : index
    %1 = vector.load %arg2[%c0_1, %c0_2] : memref<1x32xf32, #tpu.memory_space<vmem>>, vector<1x32xf32>
    %2 = vector.broadcast %0 : vector<8x1xf32> to vector<8x32xf32>
    %3 = vector.broadcast %1 : vector<1x32xf32> to vector<8x32xf32>
    %4 = arith.mulf %2, %3 : vector<8x32xf32>
    %c0_3 = arith.constant 0 : index
    %c0_4 = arith.constant 0 : index
    %5 = vector.load %arg3[%c0_3, %c0_4] : memref<1x32xf32, #tpu.memory_space<vmem>>, vector<1x32xf32>
    %6 = vector.broadcast %5 : vector<1x32xf32> to vector<8x32xf32>
    %7 = arith.subf %4, %6 : vector<8x32xf32>
    %8 = math.cos %7 : vector<8x32xf32>
    %c0_5 = arith.constant 0 : index
    %c0_6 = arith.constant 0 : index
    %9 = vector.load %arg4[%c0_5, %c0_6] : memref<8x32xf32, #tpu.memory_space<vmem>>, vector<8x32xf32>
    tpu.vector_store %arg4[%c0_5, %c0_6], %8 {strides = array<i32>} : memref<8x32xf32, #tpu.memory_space<vmem>>, vector<8x32xf32>,
    return
  }
  func.func @transform_0(%arg0: i32) -> (i32, i32) {
    %c0_i32 = arith.constant 0 : i32
    %c0_i32_0 = arith.constant 0 : i32
    return %arg0, %c0_i32 : i32, i32
  }
  func.func @transform_1(%arg0: i32) -> (i32, i32) {
    %c0_i32 = arith.constant 0 : i32
    %c0_i32_0 = arith.constant 0 : i32
    %c0_i32_1 = arith.constant 0 : i32
    return %c0_i32, %c0_i32_0 : i32, i32
  }
  func.func @transform_2(%arg0: i32) -> (i32, i32) {
    %c0_i32 = arith.constant 0 : i32
    %c0_i32_0 = arith.constant 0 : i32
    %c0_i32_1 = arith.constant 0 : i32
    return %c0_i32, %c0_i32_0 : i32, i32
  }
  func.func @transform_3(%arg0: i32) -> (i32, i32) {
    %c0_i32 = arith.constant 0 : i32
    %c0_i32_0 = arith.constant 0 : i32
    return %arg0, %c0_i32 : i32, i32
  }
}

</mosaic_0001>

<bundles_post_ra>
// kernel: tpu_custom_call.1
= control target key start
LH: loop header
LB: loop body
LE: loop exit
PB: predicated region body
PF: predicated region fallthrough
CT: control target
= control target key end

     0   :  { %v203_v1 = vmov 0   ;;  %s273_s0 = inlined_call_operand.vmem [shape: f32[8,1], index: 0, kind: input, shape index: {}]   ;;  %s274_s1 = inlined_call_operand.vmem [shape: f32[1,32], index: 1, kind: input, shape index: {}]   ;;  %s275_s2 = inlined_call_operand.vmem [shape: f32[1,32], index: 2, kind: input, shape index: {}]   ;;  %s276_s3 = inlined_call_operand.hbm [shape: f32[8,32], index: 3, kind: output, shape index: {}]  }
   0x1   :  { %v15_v0 = vld [vmem:[%s273_s0] sm:$0xff]  ;;  %174 = vset.pattern.permute.xlu0 %v203_v1 }
   0x2   :  { %19 = vperm.xlu0 %174, %v15_v0  }
   0x3   :  { %8 = vsyncpa [#allocation3], 0  ;;  %v156_v2 = vld [vmem:[%s274_s1] ss:$0 sm:$0xff]  ;;  %v204_v18 = vmov 2102212464  }
   0x4   :  { %v157_v3 = vld [vmem:[%s275_s2] ss:$0 sm:$0xff]  ;;  %v205_v20 = vmov 920167782   ;;  %v206_v24 = vmov 1326507024  }
   0x5   :  { %v207_v26 = vmov 683565275   ;;  %v208_v28 = vmov 2475754826   ;;  %v209_v31 = vmov 2131351028  }
   0x6   :  { %s210_s0 = smov [#allocation2]   ;;  %vm140_vm12 = vcmask 261120  }
   0x7   :  { %s148_s1 = sshll.u32 %s210_s0, 4  ;;  %s149_s1 = int_to_ptr.vmem [resolvable:$true] %s148_s1 }
   0x8   :  { %s179_s2 = scalar_lea.vmem %s149_s1, 128  ;;  %p184_p1 = scmp.lt.s32.totalorder %s149_s1, %s149_s1 }
   0x9   :  { %p180_p0 = scmp.ne.s32.totalorder %s149_s1, %s179_s2  ;;  %p185_p2 = scmp.lt.s32.totalorder %s179_s2, %s179_s2 }
   0xb   :  { %p186_p3 = por %p185_p2, %p184_p1 }
   0xd   :  { %p187_p4 = pnand %p186_p3, %p180_p0 }
  0x81   :  { %v20_v4 = vpop.permute.xlu0 %19 }
  0x82   :  { %v28_v5 = vmul.f32 %v156_v2, %v20_v4 }
  0x84   :  { %v240_v6 = vsub.f32 %v28_v5, %v157_v3 }
  0x86   :  { %v40_v7 = vand.u32 2139095040, %v240_v6  ;;  %v37_v8 = vand.u32 2147483647, %v240_v6  ;;  %vm39_vm7 = vcmp.lt.s32.totalorder %v240_v6, 0  ;;  %vm129_vm13 = vweird.f32 %v240_v6 }
  0x88   :  { %v41_v9 = vshrl.u32 %v40_v7, 23  ;;  %v44_v11 = vand.u32 8388607, %v37_v8  ;;  %vm38_vm8 = vcmp.le.f32.partialorder %v37_v8, 0.7853982 }
  0x8a   :  { %v158_v10 = vadd.s32 4294967169, %v41_v9  ;;  %v45_v14 = vor.u32 8388608, %v44_v11 }
  0x8c   :  { %v47_v12 = vadd.s32 1, %v158_v10  ;;  %v85_v22 = vshll.u32 %v45_v14, 8 }
  0x8e   :  { %vm48_vm0 = vcmp.gt.s32.totalorder %v47_v12, 0 }
  0x8f   :  { %v49_v13 = vsel %vm48_vm0, %v47_v12, 0 }
  0x90   :  { %v51_v15 = vand.u32 31, %v49_v13  ;;  %v50_v16 = vshrl.u32 %v49_v13, 5 }
  0x92   :  { %v52_v17 = vsub.s32 32, %v51_v15  ;;  %v63_v19 = vshll.u32 %v204_v18, %v51_v15  ;;  %v66_v21 = vshll.u32 %v205_v20, %v51_v15  ;;  %v54_v27 = vshll.u32 %v207_v26, %v51_v15 }
  0x93   :  { %v57_v30 = vshll.u32 %v208_v28, %v51_v15  ;;  %v60_v33 = vshll.u32 %v209_v31, %v51_v15  ;;  %vm72_vm1 = vcmp.lt.s32.totalorder %v50_v16, 4  ;;  %vm69_vm2 = vcmp.lt.s32.totalorder %v50_v16, 1 }
  0x94   :  { %v64_v23 = vshrl.u32 %v205_v20, %v52_v17  ;;  %v67_v25 = vshrl.u32 %v206_v24, %v52_v17  ;;  %v55_v29 = vshrl.u32 %v208_v28, %v52_v17  ;;  %v58_v32 = vshrl.u32 %v209_v31, %v52_v17 }
  0x95   :  { %v61_v34 = vshrl.u32 %v204_v18, %v52_v17  ;;  %v53_v38 = vshrl.u32 %v207_v26, %v52_v17  ;;  %vm70_vm3 = vcmp.lt.s32.totalorder %v50_v16, 2  ;;  %vm71_vm4 = vcmp.lt.s32.totalorder %v50_v16, 3 }
  0x96   :  { %v65_v35 = vor.u32 %v64_v23, %v63_v19  ;;  %v68_v36 = vor.u32 %v67_v25, %v66_v21  ;;  %v56_v37 = vor.u32 %v55_v29, %v54_v27  ;;  %v59_v39 = vor.u32 %v58_v32, %v57_v30 }
  0x97   :  { %v62_v40 = vor.u32 %v61_v34, %v60_v33 }
  0x98   :  { %v78_v41 = vsel %vm72_vm1, %v65_v35, 920167782  ;;  %v82_v42 = vsel %vm72_vm1, %v68_v36, 1326507024  ;;  %v77_v44 = vsel %vm69_vm2, %v56_v37, %v59_v39  ;;  %v73_v47 = vsel %vm69_vm2, %v53_v38, %v56_v37 }
  0x99   :  { %v74_v43 = vsel %vm72_vm1, %v62_v40, 2102212464  ;;  %v79_v45 = vsel %vm71_vm4, %v62_v40, %v78_v41  ;;  %v81_v46 = vsel %vm69_vm2, %v59_v39, %v62_v40  ;;  %v83_v50 = vsel %vm71_vm4, %v65_v35, %v82_v42 }
  0x9a   :  { %v75_v48 = vsel %vm71_vm4, %v59_v39, %v74_v43  ;;  %v80_v49 = vsel %vm70_vm3, %v77_v44, %v79_v45  ;;  %v84_v51 = vsel %vm70_vm3, %v81_v46, %v83_v50 }
  0x9b   :  { %v246_v52 = vmul.u32.u64.low %v85_v22, %v80_v49  ;;  %v247_v53 = vmul.u32.u64.high %v85_v22, %v80_v49, %v246_v52  ;;  %v249_v54 = vmul.u32.u64.low %v85_v22, %v84_v51  ;;  %v250_v55 = vmul.u32.u64.high %v85_v22, %v84_v51, %v249_v54 }
  0x9c   :  { %v76_v56 = vsel %vm70_vm3, %v73_v47, %v75_v48 }
  0x9d   :  { %v95_v57 = vadd.s32 1, %v247_v53  ;;  %v92_v58 = vmul.u32 %v85_v22, %v76_v56  ;;  %vm94_vm5 = vc.u32 %v250_v55, %v246_v52  ;;  %v93_v7 = vadd.s32 %v246_v52, %v250_v55 }
  0x9f   :  { %v96_v59 = vsel %vm94_vm5, %v95_v57, %v247_v53 }
  0xa0   :  { %v97_v60 = vadd.s32 %v96_v59, %v92_v58 }
  0xa2   :  { %v98_v61 = vadd.s32 536870912, %v97_v60 }
  0xa4   :  { %v99_v62 = vshrl.u32 %v98_v61, 30 }
  0xa6   :  { %v100_v63 = vshll.u32 %v99_v62, 30  ;;  %v123_v22 = vsub.s32 4, %v99_v62 }
  0xa8   :  { %v101_v0 = vsub.s32 %v97_v60, %v100_v63  ;;  %v124_v24 = vsel %vm39_vm7, %v123_v22, %v99_v62 }
  0xa9   :  { %v126_v25 = vsel %vm38_vm8, 0, %v124_v24 }
  0xaa   :  { %v103_v1 = vsub.s32 0, %v101_v0  ;;  %v130_v26 = vand.u32 3, %v126_v25 }
  0xac   :  { %v159_v2 = vmin.u32 %v103_v1, %v101_v0  ;;  %vm135_vm9 = vcmp.eq.s32.totalorder %v130_v26, 2  ;;  %vm132_vm10 = vcmp.eq.s32.totalorder %v130_v26, 0  ;;  %vm131_vm11 = vcmp.lt.s32.totalorder %v130_v26, 2 }
  0xae   :  { %v105_v3 = vclz %v159_v2 }
  0xb0   :  { %v160_v4 = vadd.s32 4294967294, %v105_v3 }
  0xb2   :  { %vm161_vm6 = vcmp.lt.s32.totalorder %v160_v4, 0 }
  0xb3   :  { %v108_v5 = vsel %vm161_vm6, 0, %v160_v4 }
  0xb4   :  { %v109_v9 = vsub.s32 32, %v108_v5  ;;  %v113_v10 = vsub.s32 4294967266, %v108_v5  ;;  %v110_v11 = vshll.u32 %v101_v0, %v108_v5 }
  0xb6   :  { %v111_v12 = vshrl.u32 %v93_v7, %v109_v9  ;;  %v114_v13 = vadd.s32 127, %v113_v10 }
  0xb8   :  { %v112_v14 = vor.u32 %v111_v12, %v110_v11  ;;  %v115_v15 = vshll.u32 %v114_v13, 23 }
  0xba   :  { %v116_v16 = vor.u32 4788187, %v115_v15  ;;  %v119_v18 = vcvt.s32.f32 %v112_v14 }
  0xbc   :  { %v117_v17 = vand.u32 2147483647, %v116_v16 }
  0xbe   :  { %v120_v19 = vmul.f32 %v119_v18, %v117_v17 }
  0xc0   :  { %v121_v20 = vxor.u32 2147483648, %v120_v19 }
  0xc2   :  { %v122_v21 = vsel %vm39_vm7, %v121_v20, %v120_v19 }
  0xc3   :  { %v125_v23 = vsel %vm38_vm8, %v240_v6, %v122_v21 }
  0xc4   :  { %175 = vcosq.f32 %v125_v23 }
  0xc5   :  { %177 = vsinq.f32 %v125_v23 }
  0xce   :  { %v176_v27 = vpop.eup %175 }
  0xcf   :  { %v178_v28 = vpop.eup %177  ;;  %v136_v29 = vxor.u32 2147483648, %v176_v27 }
  0xd0   :  { %v133_v30 = vxor.u32 2147483648, %v178_v28 }
  0xd1   :  { %v137_v31 = vsel %vm135_vm9, %v136_v29, %v178_v28 }
  0xd2   :  { %v134_v8 = vsel %vm132_vm10, %v176_v27, %v133_v30 }
  0xd3   :  { %v138_v32 = vsel %vm131_vm11, %v134_v8, %v137_v31 }
  0xd4   :  { %v139_v33 = vsel %vm129_vm13, nan, %v138_v32 }
  0xd5   :  { %141 = vst.msk [vmem:[#allocation2] sm:$0xff] %vm140_vm12, %v139_v33 }
  0xd6   :  { %190 = shalt.err (!%p187_p4)
}
  0xd7   :  { %s191_s20 = scalar_lea.hbm %s276_s3, 128 }
  0xd8   :  { %p192_p5 = scmp.ne.s32.totalorder %s276_s3, %s191_s20  ;;  %p195_p6 = scmp.lt.u32.totalorder %s191_s20, %s276_s3 }
  0xda   :  { %p197_p7 = pnand %p195_p6, %p192_p5 }
  0xdc   :  { %200 = shalt.err (!%p197_p7)
}
  0xdd   :  { %151 = dma.vmem_to_hbm [thread:$0]  %s149_s1, 128, %s276_s3, [#allocation3]  }
  0xde   :  { %201 = dma.done.wait [#allocation3], 128  }
  0xdf   :  { %202 = vsyncadd [#allocation3], 4294967168 }
  0xe0   :  { %155 = vsyncpa [#allocation3], 1 }

</bundles_post_ra>
